<compile_context>
chip_gen: v7x
topology: tpu7x:2x2x1
jax: 0.10.0
libtpu: 0.0.40
codegen_flags: <defaults>
</compile_context>

<pallas_src>
import functools

import jax
import jax.numpy as jnp
from jax.experimental import pallas as pl
from jax.experimental.pallas import tpu as pltpu


def _matmul_bias_prelu_kernel(w_ref, p_ref, bias_ref, alpha_ref, out_ref):
    """out = PReLU(W @ P + bias) for one (batch, spatial-tile) grid step.

    w_ref:     (Cout, K)      bf16  folded conv weights (BN scale included)
    p_ref:     (1, K, TM)     bf16  im2col patches, lane dim = spatial tile
    bias_ref:  (Cout, 1)      f32   folded BN bias
    alpha_ref: (Cout, 1)      f32   PReLU slope (per output channel)
    out_ref:   (1, Cout, TM)  bf16  lane-dense output tile
    """
    y = jnp.dot(w_ref[...], p_ref[0], preferred_element_type=jnp.float32)
    y = y + bias_ref[...]
    y = jnp.where(y > 0.0, y, alpha_ref[...] * y)
    out_ref[0] = y.astype(out_ref.dtype)


def _spatial_tile(m):
    """Biggest lane-dense tile (multiple of 128) that divides M, else full M."""
    for cand in (512, 384, 256, 128):
        if m % cand == 0:
            return cand
    return m  # lane dim == full extent (allowed; masked stores only if m < 128)


@functools.partial(jax.jit, static_argnames=("kernel_size", "stride", "out_dtype"))
def conv_bn_act(x_nchw, weight, bn_scale, bn_bias, prelu_alpha, *,
                kernel_size, stride=1, out_dtype=jnp.bfloat16):
    """Fused Conv2d(bias=False) + BatchNorm2d(eval) + PReLU.

    x_nchw:      (N, Cin, H, W)       input (PyTorch layout)
    weight:      (Cout, Cin, k, k)    conv weights (PyTorch layout)
    bn_scale:    (Cout,)              gamma / sqrt(running_var + eps)
    bn_bias:     (Cout,)              beta - running_mean * bn_scale
    prelu_alpha: scalar or (Cout,)    PReLU slope
    Returns (N, Cout, Ho, Wo) in `out_dtype` (bf16 by default).
    """
    n, cin, h, w = x_nchw.shape
    cout = weight.shape[0]
    k = kernel_size
    pad = k // 2
    ho = (h + 2 * pad - k) // stride + 1
    wo = (w + 2 * pad - k) // stride + 1
    m = ho * wo
    kk = k * k * cin

    # Zero-pad spatially and build the im2col patch matrix (N, k*k*Cin, Ho*Wo)
    # in bf16.  Tap order is (kh, kw, ci), matching the weight reshape below.
    xp = jnp.pad(x_nchw.astype(jnp.bfloat16),
                 ((0, 0), (0, 0), (pad, pad), (pad, pad)))
    taps = []
    for kh in range(k):
        for kw in range(k):
            taps.append(xp[:, :,
                           kh:kh + (ho - 1) * stride + 1:stride,
                           kw:kw + (wo - 1) * stride + 1:stride])
    patches = jnp.stack(taps, axis=1).reshape(n, kk, m)

    # Fold BN scale into the conv weights: (Cout, k*k*Cin) bf16, tap-major.
    w_folded = (weight.astype(jnp.float32)
                * bn_scale.astype(jnp.float32)[:, None, None, None])
    w_mat = (jnp.transpose(w_folded, (0, 2, 3, 1))
             .reshape(cout, kk)
             .astype(jnp.bfloat16))

    bias_col = bn_bias.reshape(cout, 1).astype(jnp.float32)
    alpha_col = jnp.broadcast_to(
        jnp.asarray(prelu_alpha, jnp.float32).reshape(-1), (cout,)).reshape(cout, 1)

    tm = _spatial_tile(m)
    grid = (n, m // tm)

    # Per-step VMEM: double-buffered patch/output tiles + resident params, with
    # headroom; clamp to [32 MiB, 64 MiB] (safe on v5e/v6e/v7x physical VMEM).
    est = 2 * (kk * tm * 2 + cout * tm * 2 + cout * kk * 2 + 2 * cout * 4)
    vmem_limit = int(min(max(4 * est, 32 << 20), 64 << 20))

    out_flat = pl.pallas_call(
        _matmul_bias_prelu_kernel,
        out_shape=jax.ShapeDtypeStruct((n, cout, m), out_dtype),
        grid_spec=pltpu.PrefetchScalarGridSpec(
            num_scalar_prefetch=0,
            grid=grid,
            in_specs=[
                pl.BlockSpec((cout, kk), lambda b, i: (0, 0)),
                pl.BlockSpec((1, kk, tm), lambda b, i: (b, 0, i)),
                pl.BlockSpec((cout, 1), lambda b, i: (0, 0)),
                pl.BlockSpec((cout, 1), lambda b, i: (0, 0)),
            ],
            out_specs=pl.BlockSpec((1, cout, tm), lambda b, i: (b, 0, i)),
        ),
        compiler_params=pltpu.CompilerParams(
            dimension_semantics=("parallel", "parallel"),
            vmem_limit_bytes=vmem_limit,
        ),
    )(w_mat, patches, bias_col, alpha_col)

    # Metadata-only reshape back to PyTorch NCHW output layout.
    return out_flat.reshape(n, cout, ho, wo)


def _reference(x_nchw, weight, bn_scale, bn_bias, prelu_alpha, kernel_size, stride):
    """Pure-JAX reference mirroring the kernel's bf16 operand quantization."""
    pad = kernel_size // 2
    w_folded = ((weight * bn_scale[:, None, None, None])
                .astype(jnp.bfloat16).astype(jnp.float32))
    xq = x_nchw.astype(jnp.bfloat16).astype(jnp.float32)
    y = jax.lax.conv_general_dilated(
        xq, w_folded,
        window_strides=(stride, stride),
        padding=((pad, pad), (pad, pad)),
        dimension_numbers=("NCHW", "OIHW", "NCHW"),
        preferred_element_type=jnp.float32,
    )
    y = y + bn_bias[None, :, None, None]
    return jnp.where(y > 0, y, prelu_alpha * y)


if __name__ == "__main__":
    key = jax.random.PRNGKey(0)
    k_x, k_w, k_g, k_b, k_m, k_v = jax.random.split(key, 6)

    # Shapes consistent with ConvBnAct(in_chs=4, out_chs=8, kernel_size=3, stride=1).
    N, Cin, H, W = 2, 4, 16, 16
    Cout, K, STRIDE = 8, 3, 1

    x = jax.random.normal(k_x, (N, Cin, H, W), jnp.float32)

    fan_in = Cin * K * K
    weight = jax.random.normal(k_w, (Cout, Cin, K, K), jnp.float32) * (2.0 / fan_in) ** 0.5
    gamma = 1.0 + 0.1 * jax.random.normal(k_g, (Cout,), jnp.float32)
    beta = 0.1 * jax.random.normal(k_b, (Cout,), jnp.float32)
    running_mean = 0.1 * jax.random.normal(k_m, (Cout,), jnp.float32)
    running_var = jnp.abs(1.0 + 0.1 * jax.random.normal(k_v, (Cout,), jnp.float32))
    eps = 1e-5
    bn_scale = gamma / jnp.sqrt(running_var + eps)
    bn_bias = beta - running_mean * bn_scale
    prelu_alpha = jnp.float32(0.25)  # nn.PReLU() default init

    out = conv_bn_act(x, weight, bn_scale, bn_bias, prelu_alpha,
                      kernel_size=K, stride=STRIDE)
    out = jax.block_until_ready(out)

    ref = _reference(x, weight, bn_scale, bn_bias, prelu_alpha, K, STRIDE)
    assert out.shape == ref.shape == (N, Cout, H, W), (out.shape, ref.shape)
    out_f32 = out.astype(jnp.float32)
    max_err = float(jnp.max(jnp.abs(out_f32 - ref)))
    # bf16 operands + bf16 output cast -> ~1e-2 absolute error budget.
    assert jnp.allclose(out_f32, ref, atol=2e-2, rtol=2e-2), max_err

    print("KERNEL_OK")
</pallas_src>

<mosaic_0001>
module attributes {stable_mosaic.version = 11 : i64} {
  func.func @_matmul_bias_prelu_kernel(%arg0: i32, %arg1: i32, %arg2: memref<8x36xbf16, #tpu.memory_space<vmem>>, %arg3: memref<1x36x256xbf16, #tpu.memory_space<vmem>>, %arg4: memref<8x1xf32, #tpu.memory_space<vmem>>, %arg5: memref<8x1xf32, #tpu.memory_space<vmem>>, %arg6: memref<1x8x256xbf16, #tpu.memory_space<vmem>>) attributes {dimension_semantics = [#tpu.dimension_semantics<parallel>, #tpu.dimension_semantics<parallel>], iteration_bounds = array<i64: 2, 1>, scalar_prefetch = 0 : i64, scratch_operands = 0 : i64, tpu.core_type = #tpu.core_type<tc>, window_params = [{pipeline_mode = #tpu.pipeline_mode<synchronous>, transform_indices = @transform_0, window_bounds = array<i64: 8, 36>}, {transform_indices = @transform_1, window_bounds = array<i64: 1, 36, 256>}, {pipeline_mode = #tpu.pipeline_mode<synchronous>, transform_indices = @transform_2, window_bounds = array<i64: 8, 1>}, {pipeline_mode = #tpu.pipeline_mode<synchronous>, transform_indices = @transform_3, window_bounds = array<i64: 8, 1>}, {transform_indices = @transform_4, window_bounds = array<i64: 1, 8, 256>}]} {
    %c0 = arith.constant 0 : index
    %c0_0 = arith.constant 0 : index
    %0 = vector.load %arg2[%c0, %c0_0] : memref<8x36xbf16, #tpu.memory_space<vmem>>, vector<8x36xbf16>
    %c0_1 = arith.constant 0 : index
    %c0_2 = arith.constant 0 : index
    %c0_3 = arith.constant 0 : index
    %1 = vector.load %arg3[%c0_1, %c0_2, %c0_3] : memref<1x36x256xbf16, #tpu.memory_space<vmem>>, vector<1x36x256xbf16>
    %2 = vector.shape_cast %1 : vector<1x36x256xbf16> to vector<36x256xbf16>
    %cst = arith.constant dense<0.000000e+00> : vector<8x256xf32>
    %3 = tpu.matmul %0, %2, %cst {dimension_numbers = #tpu.dot_dimension_numbers<[1], [0], [0], [1], [0, 0, 1, 1], [], []>} : vector<8x36xbf16>, vector<36x256xbf16>, vector<8x256xf32> -> vector<8x256xf32>
    %c0_4 = arith.constant 0 : index
    %c0_5 = arith.constant 0 : index
    %4 = vector.load %arg4[%c0_4, %c0_5] : memref<8x1xf32, #tpu.memory_space<vmem>>, vector<8x1xf32>
    %5 = vector.broadcast %4 : vector<8x1xf32> to vector<8x256xf32>
    %6 = arith.addf %3, %5 : vector<8x256xf32>
    %cst_6 = arith.constant 0.000000e+00 : f32
    %7 = vector.broadcast %cst_6 : f32 to vector<8x256xf32>
    %8 = arith.cmpf ogt, %6, %7 : vector<8x256xf32>
    %c0_7 = arith.constant 0 : index
    %c0_8 = arith.constant 0 : index
    %9 = vector.load %arg5[%c0_7, %c0_8] : memref<8x1xf32, #tpu.memory_space<vmem>>, vector<8x1xf32>
    %10 = vector.broadcast %9 : vector<8x1xf32> to vector<8x256xf32>
    %11 = arith.mulf %10, %6 : vector<8x256xf32>
    %12 = arith.select %8, %6, %11 : vector<8x256xi1>, vector<8x256xf32>
    %13 = arith.truncf %12 : vector<8x256xf32> to vector<8x256xbf16>
    %c0_9 = arith.constant 0 : index
    %c0_10 = arith.constant 0 : index
    %c0_11 = arith.constant 0 : index
    %14 = vector.load %arg6[%c0_9, %c0_10, %c0_11] : memref<1x8x256xbf16, #tpu.memory_space<vmem>>, vector<1x8x256xbf16>
    %15 = vector.shape_cast %14 : vector<1x8x256xbf16> to vector<8x256xbf16>
    %16 = vector.shape_cast %13 : vector<8x256xbf16> to vector<1x8x256xbf16>
    tpu.vector_store %arg6[%c0_9, %c0_10, %c0_11], %16 {strides = array<i32>} : memref<1x8x256xbf16, #tpu.memory_space<vmem>>, vector<1x8x256xbf16>,
    return
  }
  func.func @transform_0(%arg0: i32, %arg1: i32) -> (i32, i32) {
    %c0_i32 = arith.constant 0 : i32
    %c0_i32_0 = arith.constant 0 : i32
    %c0_i32_1 = arith.constant 0 : i32
    return %c0_i32, %c0_i32_0 : i32, i32
  }
  func.func @transform_1(%arg0: i32, %arg1: i32) -> (i32, i32, i32) {
    %c0_i32 = arith.constant 0 : i32
    %c0_i32_0 = arith.constant 0 : i32
    return %arg0, %c0_i32, %arg1 : i32, i32, i32
  }
  func.func @transform_2(%arg0: i32, %arg1: i32) -> (i32, i32) {
    %c0_i32 = arith.constant 0 : i32
    %c0_i32_0 = arith.constant 0 : i32
    %c0_i32_1 = arith.constant 0 : i32
    return %c0_i32, %c0_i32_0 : i32, i32
  }
  func.func @transform_3(%arg0: i32, %arg1: i32) -> (i32, i32) {
    %c0_i32 = arith.constant 0 : i32
    %c0_i32_0 = arith.constant 0 : i32
    %c0_i32_1 = arith.constant 0 : i32
    return %c0_i32, %c0_i32_0 : i32, i32
  }
  func.func @transform_4(%arg0: i32, %arg1: i32) -> (i32, i32, i32) {
    %c0_i32 = arith.constant 0 : i32
    %c0_i32_0 = arith.constant 0 : i32
    return %arg0, %c0_i32, %arg1 : i32, i32, i32
  }
}

</mosaic_0001>

<bundles_post_ra>
// kernel: conv_bn_act.1
= control target key start
LH: loop header
LB: loop body
LE: loop exit
PB: predicated region body
PF: predicated region fallthrough
CT: control target
= control target key end

     0   :  { %s541_s15 = smov 0   ;;  %s543_s16 = smov 0   ;;  %s587_s0 = inlined_call_operand.vmem [shape: bf16[8,36], index: 0, kind: input, shape index: {}]   ;;  %s588_s1 = inlined_call_operand.vmem [shape: bf16[2,36,256], index: 1, kind: input, shape index: {}]   ;;  %s589_s2 = inlined_call_operand.vmem [shape: f32[8,1], index: 2, kind: input, shape index: {}]   ;;  %s590_s3 = inlined_call_operand.vmem [shape: f32[8,1], index: 3, kind: input, shape index: {}]   ;;  %s591_s4 = inlined_call_operand.vmem [shape: bf16[2,8,256], index: 4, kind: output, shape index: {}]  }
   0x1   :  { %s545_s17 = smov 0  }
   0x2 LB: > { %s26_s18 = sadd.s32 1, %s509_s16  ;;  %p439_p0 = scmp.ge.s32.totalorder %s513_s17, 1  ;;  %s513_s17 = sphi %s545_s17, %s14_s17   ;;  %s509_s16 = sphi %s543_s16, %s593_s16   ;;  %s505_s15 = sphi %s541_s15, %s592_s15  }
   0x3   : > { %p28_p1 = scmp.ge.s32.totalorder %s26_s18, 2  ;;  %p183_p2 = scmp.lt.s32.totalorder %s513_s17, 3 }
   0x5   : > { %s595_s18 = smov (%p28_p1, %s26_s18), 0  ;;  %p184_p3 = pnand %p439_p0, %p183_p2 }
   0x6   : > { %p218_p4 = scmp.lt.s32.totalorder (!%p184_p3), %s505_s15, 1  ;;  %v515_v0 = vmov (!%p184_p3), 0   ;;  %v244_v1 = vld [vmem:[%s589_s2] sm:$0xff] (!%p184_p3)  ;;  %vm279_vm0 = vcmask (!%p184_p3), 1041408   ;;  %vm275_vm1 = vcmask (!%p184_p3), 293888  }
   0x7   : > { %187 = sbr.rel (%p184_p3) target bundleno = 252 (0xfc), region = 36  ;;  %318 = vmatprep.mubr.bf16.mxu0 (!%p184_p3), %v515_v0  ;;  %482 = vset.pattern.permute.xlu0 (!%p184_p3), %v515_v0  ;;  %v329_v2 = vld [vmem:[%s590_s3] sm:$0xff] (!%p184_p3) }
   0x8   : > { %247 = vperm.xlu0 (!%p184_p3), %482, %v244_v1   ;;  %v238_v11 = vld [vmem:[%s587_s0] sm:$0xf] (!%p184_p3) }
   0xc   : > { %332 = vperm.xlu0 (!%p184_p3), %482, %v329_v2  }
   0xe   : > { %s597_s15 = smov (!%p218_p4, %s505_s15), 1 }
   0xf   : > { %s456_s23 = smul.u32 40, %s597_s15  ;;  %s454_s29 = sshll.u32 %s597_s15, 3 }
  0x10   : > { %s235_s6 = scalar_lea.vmem %s591_s4, %s454_s29 }
  0x11   : > { %s225_s26 = scalar_lea.vmem %s588_s1, %s456_s23 }
  0x12   : > { %v483_v3 = vld [vmem:[%s225_s26 + $0x4] ss:$8 sps:$4 sm:$0xff]   ;;  %v485_v4 = vld [vmem:[%s225_s26] ss:$8 sps:$4 sm:$0xff]   ;;  %v486_v5 = vld [vmem:[%s225_s26 + $0x14] ss:$8 sps:$4 sm:$0xff]  }
  0x13   : > { %286 = vmatprep.subr.bf16.mxu0 %v483_v3  ;;  %v243_v6 = vld [vmem:[%s225_s26 + $0x20] sm:$0x33]  ;;  %v488_v7 = vld [vmem:[%s225_s26 + $0x10] ss:$8 sps:$4 sm:$0xff]  }
  0x14   : > { %287 = vmatpush1.bf16.msra.mxu0 %v485_v4  ;;  %v448_v8 = vcombine.high %v243_v6, %v243_v6  ;;  %v447_v9 = vcombine.low %v243_v6, %v243_v6 }
  0x15   : > { %288 = vmatprep.subr.bf16.mxu0 %v486_v5 }
  0x16   : > { %v281_v10 = vsel %vm279_vm0, %v447_v9, 0 }
  0x18   : > { %289 = vmatpush1.bf16.msra.mxu0 %v488_v7 }
  0x19   : > { %449 = vmatprep.subr.msk.bf16.mxu0 %vm279_vm0, %v448_v8 }
  0x1c   : > { %291 = vmatpush1.bf16.msra.mxu0 %v281_v10 }
  0x1f   : > { %450 = vmatmul.mubr.msk.bf16.vlgmr.msra.gmra.mrb[0].mxu0 %vm275_vm1, %v238_v11 }
  0x87   : > { %v248_v12 = vpop.permute.xlu0 %247 }
  0x8b   : > { %v333_v16 = vpop.permute.xlu0 %332 }
  0xf2   : > { %v320_v13 = vpop.f32.mrb[0].mxu0 }
  0xf3   : > { %v321_v14 = vadd.f32 %v320_v13, %v248_v12  ;;  %v322_v15 = vpop.f32.mrb[1].mxu0 }
  0xf4   : > { %v323_v17 = vadd.f32 %v322_v15, %v248_v12  ;;  %v324_v18 = vpop.f32.mrb[2].mxu0 }
  0xf5   : > { %vm327_vm2 = vcmp.gt.f32.partialorder %v321_v14, 0.0  ;;  %v335_v19 = vmul.f32 %v333_v16, %v321_v14  ;;  %v325_v20 = vpop.f32.mrb[3].mxu0 }
  0xf6   : > { %vm328_vm3 = vcmp.gt.f32.partialorder %v323_v17, 0.0  ;;  %v336_v21 = vmul.f32 %v333_v16, %v323_v17 }
  0xf7   : > { %v337_v22 = vsel %vm327_vm2, %v321_v14, %v335_v19 }
  0xf8   : > { %v338_v23 = vsel %vm328_vm3, %v323_v17, %v336_v21 }
  0xf9   : > { %v455_v24 = vpack.c.bf16 %v338_v23, %v337_v22 }
  0xfb   : > { %347 = vst [vmem:[%s235_s6] sm:$0xff] %v455_v24 }
  0xfc PF: > { %s14_s17 = sadd.s32 1, %s513_s17   ;;  %s592_s15 = smov %s509_s16 }
  0xfd   : > { %p11_p5 = scmp.ge.s32.totalorder %s14_s17, 4   ;;  %s593_s16 = smov %s595_s18 }
  0xff   :  { %13 = sbr.rel (!%p11_p5) target bundleno = 2 (0x2), region = 66 }

</bundles_post_ra>
